<compile_context>
chip_gen: v7x
topology: tpu7x:2x2x1
jax: 0.10.0
libtpu: 0.0.40
codegen_flags: <defaults>
</compile_context>

<pallas_src>
import functools

import jax
import jax.numpy as jnp
from jax.experimental import pallas as pl
from jax.experimental.pallas import tpu as pltpu


def _recip(x):
    """EUP approx reciprocal + one Newton step (~f32 accuracy)."""
    inv = pl.reciprocal(x, approx=True)
    return inv * (2.0 - x * inv)


# ---------------------------------------------------------------------------
# Fused kernel: all heads + final layer, ONE batch element per grid step.
# ---------------------------------------------------------------------------
def _fused_gat_kernel(x_ref, adj_ref, adjsq_ref, w_pack_ref, wl_pack_ref,
                      out_ref, *, alpha, nhead, n_hidden, bf16_edge):
    n_genes = x_ref.shape[1]
    n_reg = adj_ref.shape[1]
    h_total = nhead * n_hidden
    en_dim = wl_pack_ref.shape[1] - 3

    x = x_ref[0]                                      # [N, D]
    # Single MXU matmul: cols [0:H] -> w_h, cols [H:H+2*nhead] -> NEGATED
    # attention logits (a1/a2 folded into the weights at pack time).
    wh_s = jnp.dot(x, w_pack_ref[...], preferred_element_type=jnp.float32)
    wh = wh_s[:, :h_total]                            # [N, H]
    s_neg = wh_s[:, h_total:]                         # [N, 2*nhead]

    # one adjacency compare per sample, reused by every head
    edge_mask = adj_ref[0].astype(jnp.float32) > 0.0  # [R, N] bool

    ones_n = jnp.ones((n_genes, 1), jnp.float32)
    wh_plus = jnp.concatenate([wh, ones_n], axis=1)   # [N, H+1], shared RHS

    def elu(v):                                       # F.elu, alpha = 1.0
        return jnp.where(v > 0.0, v, jnp.exp(v) - 1.0)

    def edge_vals(mask, s_n):
        # e = exp(-LeakyReLU_alpha(S)) on edges.  With S pre-negated this is
        # exp(min(s_neg, alpha*s_neg)).  No stabilisation / zero-row guard,
        # matching the PyTorch module (which only asserts on NaN).
        z = jnp.minimum(s_n, alpha * s_n)
        if bf16_edge:                  # bf16 EUP/VPU path (v6e / v7x only)
            ev = jnp.exp(z.astype(jnp.bfloat16)).astype(jnp.float32)
        else:
            ev = jnp.exp(z)
        return jnp.where(mask, ev, 0.0)

    pieces = []
    for h in range(nhead):             # nhead is small and static
        # s_neg[i, j] = -(w_h[i].a1_h + w_h[j].a2_h) on the [R, N] tile
        s_rn = (s_neg[:n_reg, h:h + 1]
                + jnp.transpose(s_neg[:, nhead + h:nhead + h + 1]))
        e = edge_vals(edge_mask, s_rn)                                  # [R, N]
        # row normaliser rides the MXU via the ones column of wh_plus
        res = jnp.dot(e, wh_plus, preferred_element_type=jnp.float32)   # [R, H+1]
        inv = _recip(res[:, h_total:h_total + 1])
        pieces.append(elu(res[:, h * n_hidden:(h + 1) * n_hidden] * inv))
    pieces.append(jnp.ones((n_reg, 1), jnp.float32))
    hidden_plus = jnp.concatenate(pieces, axis=1)                       # [R, H+1]

    # Final (concat=False) layer on adj[:, :R]; one matmul emits
    # [w_h2 | 1 | -w_h2.a1 | -w_h2.a2]  (attention vecs folded at pack time).
    r2 = jnp.dot(hidden_plus, wl_pack_ref[...],
                 preferred_element_type=jnp.float32)                    # [R, en+3]
    edge_sq = adjsq_ref[0].astype(jnp.float32) > 0.0                    # [R, R]
    s2 = (r2[:, en_dim + 1:en_dim + 2]
          + jnp.transpose(r2[:, en_dim + 2:en_dim + 3]))                # [R, R]
    e2 = edge_vals(edge_sq, s2)
    res2 = jnp.dot(e2, r2[:, :en_dim + 1],
                   preferred_element_type=jnp.float32)                  # [R, en+1]
    inv2 = _recip(res2[:, en_dim:en_dim + 1])
    out_b = elu(res2[:, :en_dim] * inv2)                                # [R, en]
    # Lane-dense store: output block is [1, en_dim, R] (R on lanes).
    out_ref[0] = jnp.transpose(out_b).astype(out_ref.dtype)


# ---------------------------------------------------------------------------
# VMEM sizing (per grid step, one sample).
# ---------------------------------------------------------------------------
def _vmem_estimate_bytes(n_genes, d_model, n_reg, h_total, nhead, en_dim):
    f32 = 4
    io = (n_genes * d_model * f32 + n_reg * n_genes + n_reg * n_reg
          + en_dim * n_reg * f32)
    work = (n_genes * (2 * h_total + 2 * nhead + 2)   # wh_s + wh_plus
            + 3 * n_reg * n_genes                     # mask + s + e tiles
            + n_reg * (2 * h_total + en_dim + 8)) * f32
    par = (d_model * (h_total + 2 * nhead) + (h_total + 1) * (en_dim + 3)) * f32
    return 2 * io + work + 2 * par                    # x/adj/out double-buffered


def _maybe_vmem_limit(est_bytes):
    """Generation-aware scoped-VMEM limit (None -> keep the default)."""
    try:
        cap = int(pltpu.get_tpu_info().vmem_capacity_bytes)
    except Exception:
        cap = 64 << 20                 # conservative: v7x physical VMEM
    if est_bytes <= 12 << 20:
        return None                    # fits every generation's default
    # leave ~25% headroom for Mosaic internal scratch / semaphores
    return int(min(max(est_bytes, 16 << 20), cap * 3 // 4))


# ---------------------------------------------------------------------------
# Spare_GAT forward (multi-head path), eval mode.
# ---------------------------------------------------------------------------
def spare_gat_forward(fea_mats, adj_mats, params, *, alpha=0.2, bf16_edge=False):
    """fea_mats: [B, N, d_model], adj_mats: [B, R, N] -> [B, R, en_dim]."""
    # TODO(synk): F.dropout with training=True is stochastic; eval semantics
    #             (identity) are used here.
    # TODO(synk): the nhead=None single-layer path of Spare_GAT is not
    #             implemented (multi-head path only).
    # TODO(synk): for very large gene counts, tile N as an extra 'arbitrary'
    #             grid axis with running e@[wh|1] accumulators + pl.when
    #             epilogue (matters first on v7x's 64 MiB VMEM); a gather
    #             formulation would further help at genuinely low density.
    fea_mats = fea_mats.astype(jnp.float32)
    batch, n_genes, d_model = fea_mats.shape
    n_reg = adj_mats.shape[1]

    heads = params["heads"]
    nhead = len(heads)
    n_hidden = heads[0][0].shape[1]
    h_total = nhead * n_hidden
    w_last, a_last = params["last"]
    en_dim = w_last.shape[1]

    # --- fold attention vectors into the weights (tiny one-time XLA ops) ----
    w_all = jnp.concatenate([w.astype(jnp.float32) for (w, _) in heads], axis=1)
    a12_neg = jnp.zeros((h_total, 2 * nhead), jnp.float32)
    for h, (_, a) in enumerate(heads):
        a = a.astype(jnp.float32)
        a12_neg = a12_neg.at[h * n_hidden:(h + 1) * n_hidden, h].set(
            -a[0, :n_hidden])
        a12_neg = a12_neg.at[h * n_hidden:(h + 1) * n_hidden, nhead + h].set(
            -a[0, n_hidden:])
    # x @ w_pack -> [w_h | -(w_h.a1_h) | -(w_h.a2_h)] in a single MXU matmul
    w_pack = jnp.concatenate([w_all, w_all @ a12_neg], axis=1)

    w_last = w_last.astype(jnp.float32)
    a_last = a_last.astype(jnp.float32)
    wl_s = jnp.stack([-w_last @ a_last[0, :en_dim],
                      -w_last @ a_last[0, en_dim:]], axis=1)            # [H, 2]
    wl_top = jnp.concatenate(
        [w_last, jnp.zeros((h_total, 1), jnp.float32), wl_s], axis=1)   # [H, en+3]
    wl_bot = jnp.zeros((1, en_dim + 3), jnp.float32).at[0, en_dim].set(1.0)
    wl_pack = jnp.concatenate([wl_top, wl_bot], axis=0)                 # [H+1, en+3]

    # adjacency is only ever used as a nonzero mask -> int8 (4x less HBM
    # traffic); the last layer's narrowed adj[:, :, :R] ships as its own tiny
    # input instead of a non-128-aligned lane slice inside the kernel.
    adj_mask = (adj_mats != 0).astype(jnp.int8)
    adj_sq = adj_mask[:, :, :n_reg]

    vmem_est = _vmem_estimate_bytes(n_genes, d_model, n_reg, h_total, nhead,
                                    en_dim)
    limit = _maybe_vmem_limit(vmem_est)
    if limit is None:
        cparams = pltpu.CompilerParams(dimension_semantics=("parallel",))
    else:
        cparams = pltpu.CompilerParams(dimension_semantics=("parallel",),
                                       vmem_limit_bytes=limit)

    kernel = functools.partial(_fused_gat_kernel, alpha=alpha, nhead=nhead,
                               n_hidden=n_hidden, bf16_edge=bf16_edge)

    out_t = pl.pallas_call(
        kernel,
        out_shape=jax.ShapeDtypeStruct((batch, en_dim, n_reg), jnp.float32),
        grid_spec=pltpu.PrefetchScalarGridSpec(
            num_scalar_prefetch=0,
            grid=(batch,),
            in_specs=[
                pl.BlockSpec((1, n_genes, d_model), lambda b: (b, 0, 0)),
                pl.BlockSpec((1, n_reg, n_genes), lambda b: (b, 0, 0)),
                pl.BlockSpec((1, n_reg, n_reg), lambda b: (b, 0, 0)),
                pl.BlockSpec((d_model, h_total + 2 * nhead), lambda b: (0, 0)),
                pl.BlockSpec((h_total + 1, en_dim + 3), lambda b: (0, 0)),
            ],
            out_specs=pl.BlockSpec((1, en_dim, n_reg), lambda b: (b, 0, 0)),
        ),
        compiler_params=cparams,
    )(fea_mats, adj_mask, adj_sq, w_pack, wl_pack)

    # Kernel wrote a lane-dense [B, en_dim, R] slab; restore module layout.
    return jnp.transpose(out_t, (0, 2, 1))


# ---------------------------------------------------------------------------
# Pure-JAX reference (same math, no Pallas) for validation.
# ---------------------------------------------------------------------------
def _gat_layer_ref(x, adj, w, a, alpha, apply_elu):
    out_dim = w.shape[1]
    a1 = a[0, :out_dim]
    a2 = a[0, out_dim:]

    def one(xb, adjb):
        n_reg = adjb.shape[0]
        wh = xb @ w
        s = (wh[:n_reg] @ a1)[:, None] + (wh @ a2)[None, :]
        s = jnp.where(s > 0, s, alpha * s)
        e = jnp.exp(-s) * (adjb != 0)
        rs = jnp.sum(e, axis=1, keepdims=True)
        res = (e @ wh) / rs
        if apply_elu:
            res = jnp.where(res > 0, res, jnp.exp(res) - 1.0)
        return res

    return jax.vmap(one)(x, adj)


def spare_gat_forward_ref(fea_mats, adj_mats, params, *, alpha=0.2):
    heads = [_gat_layer_ref(fea_mats, adj_mats, W, a, alpha, True)
             for (W, a) in params["heads"]]
    x = jnp.concatenate(heads, axis=-1)
    n_reg = adj_mats.shape[1]
    return _gat_layer_ref(x, adj_mats[:, :, :n_reg],
                          params["last"][0], params["last"][1], alpha, True)


# ---------------------------------------------------------------------------
# Parameter init (matches nn.init.xavier_normal_ with gain=1.414).
# ---------------------------------------------------------------------------
def xavier_normal(key, shape, gain=1.414):
    fan_in, fan_out = shape[1], shape[0]  # torch convention for 2D tensors
    std = gain * (2.0 / (fan_in + fan_out)) ** 0.5
    return std * jax.random.normal(key, shape, dtype=jnp.float32)


if __name__ == "__main__":
    # Small synthetic problem consistent with the module's forward.
    B = 2            # batch of (fea_mat, adj_mat) pairs
    N = 32           # number of genes (rows of fea_mat, cols of adj_mat)
    R = 16           # number of regulons (rows of adj_mat)
    d_model = 16     # input features per gene
    n_hidden = 16    # hidden units per attention head
    en_dim = 2       # encoded features per gene
    nhead = 2        # attention heads
    alpha = 0.2

    key = jax.random.PRNGKey(0)
    ks = jax.random.split(key, 4 + 2 * nhead)

    fea_mats = jax.random.normal(ks[0], (B, N, d_model), dtype=jnp.float32)
    adj_mats = jax.random.bernoulli(ks[1], 0.4, (B, R, N)).astype(jnp.float32)
    # guarantee every regulon has at least one edge (even after narrowing to
    # adj[:, :, :R]) -> no division by zero, mirroring the module's asserts
    adj_mats = adj_mats.at[:, :, 0].set(1.0)

    heads = []
    for h in range(nhead):
        W = xavier_normal(ks[2 + 2 * h], (d_model, n_hidden))
        a = xavier_normal(ks[3 + 2 * h], (1, 2 * n_hidden))
        heads.append((W, a))
    last_W = xavier_normal(ks[2 + 2 * nhead], (n_hidden * nhead, en_dim))
    last_a = xavier_normal(ks[3 + 2 * nhead], (1, 2 * en_dim))
    params = {"heads": heads, "last": (last_W, last_a)}

    out = jax.block_until_ready(
        spare_gat_forward(fea_mats, adj_mats, params, alpha=alpha))
    ref = jax.block_until_ready(
        spare_gat_forward_ref(fea_mats, adj_mats, params, alpha=alpha))

    assert out.shape == (B, R, en_dim), out.shape
    assert jnp.all(jnp.isfinite(out))
    max_err = float(jnp.max(jnp.abs(out - ref)))
    # Newton-refined reciprocal + folded (xW)a vs x(Wa) association -> small
    # f32 rounding differences only.
    assert jnp.allclose(out, ref, rtol=2e-3, atol=2e-3), max_err

    print("KERNEL_OK")
</pallas_src>

<mosaic_0001>
module attributes {stable_mosaic.version = 11 : i64} {
  func.func @_fused_gat_kernel(%arg0: i32, %arg1: memref<1x32x16xf32, #tpu.memory_space<vmem>>, %arg2: memref<1x16x32xi8, #tpu.memory_space<vmem>>, %arg3: memref<1x16x16xi8, #tpu.memory_space<vmem>>, %arg4: memref<16x36xf32, #tpu.memory_space<vmem>>, %arg5: memref<33x5xf32, #tpu.memory_space<vmem>>, %arg6: memref<1x2x16xf32, #tpu.memory_space<vmem>>) attributes {dimension_semantics = [#tpu.dimension_semantics<parallel>], iteration_bounds = array<i64: 2>, scalar_prefetch = 0 : i64, scratch_operands = 0 : i64, tpu.core_type = #tpu.core_type<tc>, window_params = [{transform_indices = @transform_0, window_bounds = array<i64: 1, 32, 16>}, {transform_indices = @transform_1, window_bounds = array<i64: 1, 16, 32>}, {transform_indices = @transform_2, window_bounds = array<i64: 1, 16, 16>}, {pipeline_mode = #tpu.pipeline_mode<synchronous>, transform_indices = @transform_3, window_bounds = array<i64: 16, 36>}, {pipeline_mode = #tpu.pipeline_mode<synchronous>, transform_indices = @transform_4, window_bounds = array<i64: 33, 5>}, {transform_indices = @transform_5, window_bounds = array<i64: 1, 2, 16>}]} {
    %c0 = arith.constant 0 : index
    %c0_0 = arith.constant 0 : index
    %c0_1 = arith.constant 0 : index
    %0 = vector.load %arg1[%c0, %c0_0, %c0_1] : memref<1x32x16xf32, #tpu.memory_space<vmem>>, vector<1x32x16xf32>
    %1 = vector.shape_cast %0 : vector<1x32x16xf32> to vector<32x16xf32>
    %c0_2 = arith.constant 0 : index
    %c0_3 = arith.constant 0 : index
    %2 = vector.load %arg4[%c0_2, %c0_3] : memref<16x36xf32, #tpu.memory_space<vmem>>, vector<16x36xf32>
    %cst = arith.constant dense<0.000000e+00> : vector<32x36xf32>
    %3 = tpu.matmul %1, %2, %cst {dimension_numbers = #tpu.dot_dimension_numbers<[1], [0], [0], [1], [0, 0, 1, 1], [], []>} : vector<32x16xf32>, vector<16x36xf32>, vector<32x36xf32> -> vector<32x36xf32>
    %4 = vector.extract_strided_slice %3 {offsets = [0, 0], sizes = [32, 32], strides = [1, 1]} : vector<32x36xf32> to vector<32x32xf32>
    %5 = vector.extract_strided_slice %3 {offsets = [0, 32], sizes = [32, 4], strides = [1, 1]} : vector<32x36xf32> to vector<32x4xf32>
    %c0_4 = arith.constant 0 : index
    %c0_5 = arith.constant 0 : index
    %c0_6 = arith.constant 0 : index
    %6 = vector.load %arg2[%c0_4, %c0_5, %c0_6] : memref<1x16x32xi8, #tpu.memory_space<vmem>>, vector<1x16x32xi8>
    %7 = vector.shape_cast %6 : vector<1x16x32xi8> to vector<16x32xi8>
    %8 = arith.sitofp %7 : vector<16x32xi8> to vector<16x32xf32>
    %cst_7 = arith.constant 0.000000e+00 : f32
    %9 = vector.broadcast %cst_7 : f32 to vector<16x32xf32>
    %10 = arith.cmpf ogt, %8, %9 : vector<16x32xf32>
    %cst_8 = arith.constant 1.000000e+00 : f32
    %11 = vector.broadcast %cst_8 : f32 to vector<32x1xf32>
    %12 = tpu.concatenate %4, %11 in 1 : vector<32x32xf32>, vector<32x1xf32> -> vector<32x33xf32>
    %13 = vector.extract_strided_slice %5 {offsets = [0, 0], sizes = [16, 1], strides = [1, 1]} : vector<32x4xf32> to vector<16x1xf32>
    %14 = vector.extract_strided_slice %5 {offsets = [0, 2], sizes = [32, 1], strides = [1, 1]} : vector<32x4xf32> to vector<32x1xf32>
    %15 = tpu.transpose %14, [1, 0] : vector<32x1xf32> -> vector<1x32xf32>
    %16 = vector.broadcast %13 : vector<16x1xf32> to vector<16x32xf32>
    %17 = vector.broadcast %15 : vector<1x32xf32> to vector<16x32xf32>
    %18 = arith.addf %16, %17 : vector<16x32xf32>
    %cst_9 = arith.constant 2.000000e-01 : f32
    %19 = vector.broadcast %cst_9 : f32 to vector<16x32xf32>
    %20 = arith.mulf %19, %18 : vector<16x32xf32>
    %21 = arith.minimumf %18, %20 : vector<16x32xf32>
    %22 = math.exp %21 : vector<16x32xf32>
    %cst_10 = arith.constant 0.000000e+00 : f32
    %23 = vector.broadcast %cst_10 : f32 to vector<16x32xf32>
    %24 = arith.select %10, %22, %23 : vector<16x32xi1>, vector<16x32xf32>
    %cst_11 = arith.constant dense<0.000000e+00> : vector<16x33xf32>
    %25 = tpu.matmul %24, %12, %cst_11 {dimension_numbers = #tpu.dot_dimension_numbers<[1], [0], [0], [1], [0, 0, 1, 1], [], []>} : vector<16x32xf32>, vector<32x33xf32>, vector<16x33xf32> -> vector<16x33xf32>
    %26 = vector.extract_strided_slice %25 {offsets = [0, 32], sizes = [16, 1], strides = [1, 1]} : vector<16x33xf32> to vector<16x1xf32>
    %27 = tpu.reciprocal %26 {approx = true} : vector<16x1xf32> -> vector<16x1xf32>
    %28 = arith.mulf %26, %27 : vector<16x1xf32>
    %cst_12 = arith.constant 2.000000e+00 : f32
    %29 = vector.broadcast %cst_12 : f32 to vector<16x1xf32>
    %30 = arith.subf %29, %28 : vector<16x1xf32>
    %31 = arith.mulf %27, %30 : vector<16x1xf32>
    %32 = vector.extract_strided_slice %25 {offsets = [0, 0], sizes = [16, 16], strides = [1, 1]} : vector<16x33xf32> to vector<16x16xf32>
    %33 = vector.broadcast %31 : vector<16x1xf32> to vector<16x16xf32>
    %34 = arith.mulf %32, %33 : vector<16x16xf32>
    %cst_13 = arith.constant 0.000000e+00 : f32
    %35 = vector.broadcast %cst_13 : f32 to vector<16x16xf32>
    %36 = arith.cmpf ogt, %34, %35 : vector<16x16xf32>
    %37 = math.exp %34 : vector<16x16xf32>
    %cst_14 = arith.constant 1.000000e+00 : f32
    %38 = vector.broadcast %cst_14 : f32 to vector<16x16xf32>
    %39 = arith.subf %37, %38 : vector<16x16xf32>
    %40 = arith.select %36, %34, %39 : vector<16x16xi1>, vector<16x16xf32>
    %41 = vector.extract_strided_slice %5 {offsets = [0, 1], sizes = [16, 1], strides = [1, 1]} : vector<32x4xf32> to vector<16x1xf32>
    %42 = vector.extract_strided_slice %5 {offsets = [0, 3], sizes = [32, 1], strides = [1, 1]} : vector<32x4xf32> to vector<32x1xf32>
    %43 = tpu.transpose %42, [1, 0] : vector<32x1xf32> -> vector<1x32xf32>
    %44 = vector.broadcast %41 : vector<16x1xf32> to vector<16x32xf32>
    %45 = vector.broadcast %43 : vector<1x32xf32> to vector<16x32xf32>
    %46 = arith.addf %44, %45 : vector<16x32xf32>
    %cst_15 = arith.constant 2.000000e-01 : f32
    %47 = vector.broadcast %cst_15 : f32 to vector<16x32xf32>
    %48 = arith.mulf %47, %46 : vector<16x32xf32>
    %49 = arith.minimumf %46, %48 : vector<16x32xf32>
    %50 = math.exp %49 : vector<16x32xf32>
    %cst_16 = arith.constant 0.000000e+00 : f32
    %51 = vector.broadcast %cst_16 : f32 to vector<16x32xf32>
    %52 = arith.select %10, %50, %51 : vector<16x32xi1>, vector<16x32xf32>
    %cst_17 = arith.constant dense<0.000000e+00> : vector<16x33xf32>
    %53 = tpu.matmul %52, %12, %cst_17 {dimension_numbers = #tpu.dot_dimension_numbers<[1], [0], [0], [1], [0, 0, 1, 1], [], []>} : vector<16x32xf32>, vector<32x33xf32>, vector<16x33xf32> -> vector<16x33xf32>
    %54 = vector.extract_strided_slice %53 {offsets = [0, 32], sizes = [16, 1], strides = [1, 1]} : vector<16x33xf32> to vector<16x1xf32>
    %55 = tpu.reciprocal %54 {approx = true} : vector<16x1xf32> -> vector<16x1xf32>
    %56 = arith.mulf %54, %55 : vector<16x1xf32>
    %cst_18 = arith.constant 2.000000e+00 : f32
    %57 = vector.broadcast %cst_18 : f32 to vector<16x1xf32>
    %58 = arith.subf %57, %56 : vector<16x1xf32>
    %59 = arith.mulf %55, %58 : vector<16x1xf32>
    %60 = vector.extract_strided_slice %53 {offsets = [0, 16], sizes = [16, 16], strides = [1, 1]} : vector<16x33xf32> to vector<16x16xf32>
    %61 = vector.broadcast %59 : vector<16x1xf32> to vector<16x16xf32>
    %62 = arith.mulf %60, %61 : vector<16x16xf32>
    %cst_19 = arith.constant 0.000000e+00 : f32
    %63 = vector.broadcast %cst_19 : f32 to vector<16x16xf32>
    %64 = arith.cmpf ogt, %62, %63 : vector<16x16xf32>
    %65 = math.exp %62 : vector<16x16xf32>
    %cst_20 = arith.constant 1.000000e+00 : f32
    %66 = vector.broadcast %cst_20 : f32 to vector<16x16xf32>
    %67 = arith.subf %65, %66 : vector<16x16xf32>
    %68 = arith.select %64, %62, %67 : vector<16x16xi1>, vector<16x16xf32>
    %cst_21 = arith.constant 1.000000e+00 : f32
    %69 = vector.broadcast %cst_21 : f32 to vector<16x1xf32>
    %70 = tpu.concatenate %40, %68, %69 in 1 : vector<16x16xf32>, vector<16x16xf32>, vector<16x1xf32> -> vector<16x33xf32>
    %c0_22 = arith.constant 0 : index
    %c0_23 = arith.constant 0 : index
    %71 = vector.load %arg5[%c0_22, %c0_23] : memref<33x5xf32, #tpu.memory_space<vmem>>, vector<33x5xf32>
    %cst_24 = arith.constant dense<0.000000e+00> : vector<16x5xf32>
    %72 = tpu.matmul %70, %71, %cst_24 {dimension_numbers = #tpu.dot_dimension_numbers<[1], [0], [0], [1], [0, 0, 1, 1], [], []>} : vector<16x33xf32>, vector<33x5xf32>, vector<16x5xf32> -> vector<16x5xf32>
    %c0_25 = arith.constant 0 : index
    %c0_26 = arith.constant 0 : index
    %c0_27 = arith.constant 0 : index
    %73 = vector.load %arg3[%c0_25, %c0_26, %c0_27] : memref<1x16x16xi8, #tpu.memory_space<vmem>>, vector<1x16x16xi8>
    %74 = vector.shape_cast %73 : vector<1x16x16xi8> to vector<16x16xi8>
    %75 = arith.sitofp %74 : vector<16x16xi8> to vector<16x16xf32>
    %cst_28 = arith.constant 0.000000e+00 : f32
    %76 = vector.broadcast %cst_28 : f32 to vector<16x16xf32>
    %77 = arith.cmpf ogt, %75, %76 : vector<16x16xf32>
    %78 = vector.extract_strided_slice %72 {offsets = [0, 3], sizes = [16, 1], strides = [1, 1]} : vector<16x5xf32> to vector<16x1xf32>
    %79 = vector.extract_strided_slice %72 {offsets = [0, 4], sizes = [16, 1], strides = [1, 1]} : vector<16x5xf32> to vector<16x1xf32>
    %80 = tpu.transpose %79, [1, 0] : vector<16x1xf32> -> vector<1x16xf32>
    %81 = vector.broadcast %78 : vector<16x1xf32> to vector<16x16xf32>
    %82 = vector.broadcast %80 : vector<1x16xf32> to vector<16x16xf32>
    %83 = arith.addf %81, %82 : vector<16x16xf32>
    %cst_29 = arith.constant 2.000000e-01 : f32
    %84 = vector.broadcast %cst_29 : f32 to vector<16x16xf32>
    %85 = arith.mulf %84, %83 : vector<16x16xf32>
    %86 = arith.minimumf %83, %85 : vector<16x16xf32>
    %87 = math.exp %86 : vector<16x16xf32>
    %cst_30 = arith.constant 0.000000e+00 : f32
    %88 = vector.broadcast %cst_30 : f32 to vector<16x16xf32>
    %89 = arith.select %77, %87, %88 : vector<16x16xi1>, vector<16x16xf32>
    %90 = vector.extract_strided_slice %72 {offsets = [0, 0], sizes = [16, 3], strides = [1, 1]} : vector<16x5xf32> to vector<16x3xf32>
    %cst_31 = arith.constant dense<0.000000e+00> : vector<16x3xf32>
    %91 = tpu.matmul %89, %90, %cst_31 {dimension_numbers = #tpu.dot_dimension_numbers<[1], [0], [0], [1], [0, 0, 1, 1], [], []>} : vector<16x16xf32>, vector<16x3xf32>, vector<16x3xf32> -> vector<16x3xf32>
    %92 = vector.extract_strided_slice %91 {offsets = [0, 2], sizes = [16, 1], strides = [1, 1]} : vector<16x3xf32> to vector<16x1xf32>
    %93 = tpu.reciprocal %92 {approx = true} : vector<16x1xf32> -> vector<16x1xf32>
    %94 = arith.mulf %92, %93 : vector<16x1xf32>
    %cst_32 = arith.constant 2.000000e+00 : f32
    %95 = vector.broadcast %cst_32 : f32 to vector<16x1xf32>
    %96 = arith.subf %95, %94 : vector<16x1xf32>
    %97 = arith.mulf %93, %96 : vector<16x1xf32>
    %98 = vector.extract_strided_slice %91 {offsets = [0, 0], sizes = [16, 2], strides = [1, 1]} : vector<16x3xf32> to vector<16x2xf32>
    %99 = vector.broadcast %97 : vector<16x1xf32> to vector<16x2xf32>
    %100 = arith.mulf %98, %99 : vector<16x2xf32>
    %cst_33 = arith.constant 0.000000e+00 : f32
    %101 = vector.broadcast %cst_33 : f32 to vector<16x2xf32>
    %102 = arith.cmpf ogt, %100, %101 : vector<16x2xf32>
    %103 = math.exp %100 : vector<16x2xf32>
    %cst_34 = arith.constant 1.000000e+00 : f32
    %104 = vector.broadcast %cst_34 : f32 to vector<16x2xf32>
    %105 = arith.subf %103, %104 : vector<16x2xf32>
    %106 = arith.select %102, %100, %105 : vector<16x2xi1>, vector<16x2xf32>
    %107 = tpu.transpose %106, [1, 0] : vector<16x2xf32> -> vector<2x16xf32>
    %c0_35 = arith.constant 0 : index
    %c0_36 = arith.constant 0 : index
    %c0_37 = arith.constant 0 : index
    %108 = vector.load %arg6[%c0_35, %c0_36, %c0_37] : memref<1x2x16xf32, #tpu.memory_space<vmem>>, vector<1x2x16xf32>
    %109 = vector.shape_cast %108 : vector<1x2x16xf32> to vector<2x16xf32>
    %110 = vector.shape_cast %107 : vector<2x16xf32> to vector<1x2x16xf32>
    tpu.vector_store %arg6[%c0_35, %c0_36, %c0_37], %110 {strides = array<i32>} : memref<1x2x16xf32, #tpu.memory_space<vmem>>, vector<1x2x16xf32>,
    return
  }
  func.func @transform_0(%arg0: i32) -> (i32, i32, i32) {
    %c0_i32 = arith.constant 0 : i32
    %c0_i32_0 = arith.constant 0 : i32
    %c0_i32_1 = arith.constant 0 : i32
    return %arg0, %c0_i32, %c0_i32_0 : i32, i32, i32
  }
  func.func @transform_1(%arg0: i32) -> (i32, i32, i32) {
    %c0_i32 = arith.constant 0 : i32
    %c0_i32_0 = arith.constant 0 : i32
    %c0_i32_1 = arith.constant 0 : i32
    return %arg0, %c0_i32, %c0_i32_0 : i32, i32, i32
  }
  func.func @transform_2(%arg0: i32) -> (i32, i32, i32) {
    %c0_i32 = arith.constant 0 : i32
    %c0_i32_0 = arith.constant 0 : i32
    %c0_i32_1 = arith.constant 0 : i32
    return %arg0, %c0_i32, %c0_i32_0 : i32, i32, i32
  }
  func.func @transform_3(%arg0: i32) -> (i32, i32) {
    %c0_i32 = arith.constant 0 : i32
    %c0_i32_0 = arith.constant 0 : i32
    %c0_i32_1 = arith.constant 0 : i32
    return %c0_i32, %c0_i32_0 : i32, i32
  }
  func.func @transform_4(%arg0: i32) -> (i32, i32) {
    %c0_i32 = arith.constant 0 : i32
    %c0_i32_0 = arith.constant 0 : i32
    %c0_i32_1 = arith.constant 0 : i32
    return %c0_i32, %c0_i32_0 : i32, i32
  }
  func.func @transform_5(%arg0: i32) -> (i32, i32, i32) {
    %c0_i32 = arith.constant 0 : i32
    %c0_i32_0 = arith.constant 0 : i32
    %c0_i32_1 = arith.constant 0 : i32
    return %arg0, %c0_i32, %c0_i32_0 : i32, i32, i32
  }
}

</mosaic_0001>

<bundles_post_ra>
// kernel: tpu_custom_call.1
= control target key start
LH: loop header
LB: loop body
LE: loop exit
PB: predicated region body
PF: predicated region fallthrough
CT: control target
= control target key end

     0   :  { %10 = vsyncpa [#allocation3], 0  ;;  %s1660_s0 = inlined_call_operand.vmem [shape: f32[2,32,16], index: 0, kind: input, shape index: {}]   ;;  %s1661_s1 = inlined_call_operand.vmem [shape: s8[2,16,32], index: 1, kind: input, shape index: {}]   ;;  %s1662_s2 = inlined_call_operand.vmem [shape: s8[2,16,16], index: 2, kind: input, shape index: {}]   ;;  %s1663_s3 = inlined_call_operand.vmem [shape: f32[16,36], index: 3, kind: input, shape index: {}]   ;;  %s1664_s4 = inlined_call_operand.vmem [shape: f32[33,5], index: 4, kind: input, shape index: {}]   ;;  %s1665_s5 = inlined_call_operand.hbm [shape: f32[2,2,16], index: 5, kind: output, shape index: {}]  }
   0x1   :  { %12 = vsyncpa [#allocation3 + $0x1], 0  ;;  %s1502_s18 = smov 0   ;;  %s1504_s19 = smov 0  }
   0x2   :  { %s1506_s20 = smov 0   ;;  %s1508_s21 = smov 0  }
   0x3 LB: > { %s1523_s22 = sadd.s32 4294967295, %s1462_s21   ;;  %s1151_s23 = sadd.s32 4294967294, %s1462_s21   ;;  %s1462_s21 = sphi %s1508_s21, %s1671_s21   ;;  %s1458_s20 = sphi %s1506_s20, %s1670_s20   ;;  %s1454_s19 = sphi %s1504_s19, %s1669_s19   ;;  %s1450_s18 = sphi %s1502_s18, %s1668_s18  }
   0x4   : > { %s1527_s24 = sadd.s32 1, %s1462_s21   ;;  %s145_s25 = sadd.s32 1, %s1458_s20 }
   0x5   : > { %s142_s26 = ssub.s32 %s1462_s21, %s1527_s24  ;;  %p155_p0 = scmp.ne.s32.totalorder %s1458_s20, %s1454_s19 }
   0x6   : > { %p143_p1 = scmp.eq.s32.totalorder %s142_s26, 0  ;;  %p156_p2 = scmp.eq.s32.totalorder %s1523_s22, 1 }
   0x7   : > { %p161_p3 = scmp.ne.s32.totalorder %s1454_s19, %s1450_s18  ;;  %p162_p4 = scmp.eq.s32.totalorder %s1151_s23, 1 }
   0x8   : > { %s1538_s27 = scalar_select %p143_p1, %s1458_s20, %s145_s25  }
   0x9   : > { %p1540_p5 = por %p156_p2, %p155_p0  ;;  %p1544_p6 = por %p162_p4, %p161_p3 }
   0xa   : > { %p1154_p7 = scmp.ge.s32.totalorder %s1462_s21, 1  ;;  %p210_p8 = scmp.lt.s32.totalorder %s1462_s21, 3 }
   0xc   : > { %p211_p9 = pnand %p1154_p7, %p210_p8 }
   0xd   : > { %v267_v0 = vld [vmem:[%s1663_s3] sm:$0xff] (!%p211_p9)  ;;  %v268_v1 = vld [vmem:[%s1663_s3 + $0x8] sm:$0xff] (!%p211_p9)  ;;  %p248_p10 = scmp.lt.s32.totalorder (!%p211_p9), %s1523_s22, 1  ;;  %vm269_vm0 = vcmask (!%p211_p9), 130048   ;;  %v1464_v7 = vmov (!%p211_p9), 33   ;;  %v1465_v8 = vmov (!%p211_p9), 32   ;;  %v436_v27 = vlaneseq (!%p211_p9) }
   0xe   : > { %214 = sbr.rel (%p211_p9) target bundleno = 1892 (0x764), region = 40  ;;  %v1277_v2 = vpack.c.bf16 (!%p211_p9), %v268_v1, %v267_v0  ;;  %1357 = vset.pattern.permute.xlu1 (!%p211_p9), %v1464_v7  ;;  %1356 = vset.pattern.permute.xlu0 (!%p211_p9), %v1465_v8  ;;  %vm375_vm1 = vcmask (!%p211_p9), 261120   ;;  %s1466_s14 = smov (!%p211_p9), 94   ;;  %vm758_vm4 = vcmask (!%p211_p9), 1040384   ;;  %vm751_vm7 = vcmask (!%p211_p9), 269312  }
   0xf   : > { %s1467_s15 = smov (!%p211_p9), 93   ;;  %v437_v29 = vshrl.u32 (!%p211_p9), %v436_v27, 7  ;;  %v749_v27 = vld [vmem:[%s1664_s4 + $0x18] sm:$0xff] (!%p211_p9)  ;;  %s1182_s26 = sshll.u32 (!%p211_p9), %s1523_s22, 5  ;;  %vm1052_vm14 = vcmask (!%p211_p9), 123904  }
  0x10   : > { %1278 = vmatprep.subr.bf16.mxu0 (!%p211_p9), %v1277_v2 }
  0x11   : > { %1280 = vmatpush3.bf16.msra.mxu0 (!%p211_p9), %v1277_v2  ;;  %v1572_v32 = vsub.s32 (!%p211_p9), 0, %v437_v29  ;;  %v750_v29 = vld [vmem:[%s1664_s4 + $0x20] sm:$0x1] (!%p211_p9) }
  0x15   : > { %s1558_s9 = scalar_select %p248_p10, %s1523_s22, 1 }
  0x16   : > { %s1471_s22 = smov [#allocation2]  }
  0x17   : > { %s1185_s10 = sshll.u32 %s1558_s9, 5  ;;  %s1186_s16 = sshll.u32 %s1558_s9, 2 }
  0x18   : > { %s252_s13 = scalar_lea.vmem %s1660_s0, %s1185_s10  ;;  %s257_s25 = scalar_lea.vmem %s1661_s1, %s1186_s16 }
  0x19   : > { %v263_v3 = vld [vmem:[%s252_s13] sm:$0xff]  ;;  %v264_v4 = vld [vmem:[%s252_s13 + $0x8] sm:$0xff]  ;;  %v265_v5 = vld [vmem:[%s252_s13 + $0x10] sm:$0xff]  ;;  %s245_s9 = sand.u32 1, %s1454_s19   ;;  %s1618_s10 = scalar_lea.hbm %s1665_s5, %s1182_s26 }
  0x1a   : > { %1229 = vmatprep.mubr.msk.f32.mxu0 %vm269_vm0, %v263_v3  ;;  %v266_v6 = vld [vmem:[%s252_s13 + $0x18] sm:$0xff]  ;;  %v1189_v46 = vld [vmem:[%s257_s25] sm:$0xf]   ;;  %s262_s25 = scalar_lea.vmem %s1662_s2, %s1186_s16  ;;  %s1155_s16 = sshll.u32 %s245_s9, 1 }
  0x1b   : > { %1230 = vmatmul.mubr.msk.f32.vlgmr.msra.gmra.mrb[0].mxu0 %vm269_vm0, %v264_v4  ;;  %v1190_v52 = vunpack.c.0.s8 %v1189_v46  ;;  %v1191_v54 = vunpack.c.1.s8 %v1189_v46  ;;  %s247_s30 = scalar_lea.vmem [#allocation2], %s1155_s16  ;;  %s1055_s11 = scalar_lea.sflag [#allocation3], %s245_s9 }
  0x1c   : > { %1232 = vmatprep.mubr.msk.f32.mxu0 %vm269_vm0, %v265_v5  ;;  %s1068_s6 = sshll.u32 %s247_s30, 4  ;;  %s1404_s13 = sshll.u32 %s1471_s22, 4  ;;  %s1620_s6 = int_to_ptr.vmem [resolvable:$true] %s1068_s6  ;;  %s1405_s13 = int_to_ptr.vmem [resolvable:$false] %s1404_s13 }
  0x1d   : > { %v371_v57 = vcvt.s32.f32 %v1190_v52  ;;  %v372_v58 = vcvt.s32.f32 %v1191_v54  ;;  %s1400_s12 = scalar_lea.vmem %s1620_s6, 32  ;;  %p1407_p0 = scmp.lt.s32.totalorder %s1620_s6, %s1405_s13 }
  0x1e   : > { %p1401_p11 = scmp.ne.s32.totalorder %s1620_s6, %s1400_s12 }
  0x1f   : > { %1233 = vmatmul.mubr.msk.f32.gmra.mrb[2].mxu0 %vm269_vm0, %v266_v6  ;;  %vm373_vm2 = vcmp.gt.f32.partialorder %v371_v57, 0.0  ;;  %vm374_vm3 = vcmp.gt.f32.partialorder %v372_v58, 0.0 }
  0x20   : > { %p1402_p12 = pnand %p1401_p11, %p1540_p5 }
  0x22   : > { %p1403_p13 = pneg %p1402_p12 }
  0xee   : > { %v1231_v9 = vpop.f32.mrb[0].mxu0 }
  0xef   : > { %386 = vrot.lane.b32.xlu1 %v1231_v9, %s1466_s14  ;;  %v348_v10 = vpop.f32.mrb[1].mxu0  ;;  %v377_v11 = vsel %vm375_vm1, %v1231_v9, 1.0 }
  0xf0   : > { %384 = vrot.lane.b32.xlu0 %v348_v10, %s1466_s14  ;;  %v376_v12 = vsel %vm375_vm1, %v348_v10, 1.0 }
  0xf1   : > { %v1281_v13 = vpack.c.bf16 %v377_v11, %v376_v12 }
  0xf2   : > { %v1234_v14 = vpop.f32.mrb[2].mxu0 }
  0xf3   : > { %565 = vrot.lane.b32.xlu1 %v1231_v9, %s1467_s15  ;;  %1282 = vmatprep.subr.bf16.mxu1 %v1281_v13  ;;  %v379_v15 = vsel %vm375_vm1, %v1234_v14, 1.0  ;;  %v358_v16 = vpop.f32.mrb[3].mxu0 }
  0xf4   : > { %1290 = vmatprep.subr.bf16.mxu0 %v1281_v13  ;;  %563 = vrot.lane.b32.xlu0 %v348_v10, %s1467_s15  ;;  %v378_v17 = vsel %vm375_vm1, %v358_v16, 1.0 }
  0xf5   : > { %1284 = vmatpush3.bf16.msra.mxu1 %v1281_v13  ;;  %1292 = vmatpush3.bf16.msra.mxu0 %v1281_v13  ;;  %v1285_v18 = vpack.c.bf16 %v379_v15, %v378_v17 }
  0xf7   : > { %569 = vrot.lane.b32.xlu1 %v1234_v14, %s1467_s15  ;;  %1286 = vmatprep.subr.bf16.mxu1 %v1285_v18 }
  0xf8   : > { %388 = vrot.lane.b32.xlu0 %v358_v16, %s1466_s14  ;;  %1294 = vmatprep.subr.bf16.mxu0 %v1285_v18 }
  0xf9   : > { %1288 = vmatpush3.bf16.msra.mxu1 %v1285_v18  ;;  %1296 = vmatpush3.bf16.msra.mxu0 %v1285_v18 }
  0xfb   : > { %567 = vrot.lane.b32.xlu1 %v358_v16, %s1467_s15  ;;  %s1469_s15 = smov 124  }
  0xfc   : > { %390 = vrot.lane.b32.xlu0 %v1234_v14, %s1466_s14  ;;  %s1406_s14 = scalar_lea.vmem %s1405_s13, 64 }
  0xfd   : > { %p1408_p1 = scmp.lt.s32.totalorder %s1406_s14, %s1400_s12 }
  0xff   : > { %608 = vperm.xlu1 %1357, %v348_v10   ;;  %p1409_p2 = por %p1408_p1, %p1407_p0 }
 0x100   : > { %429 = vperm.xlu0 %1356, %v348_v10  }
 0x101   : > { %p1410_p3 = pnand %p1409_p2, %p1403_p13 }
 0x103   : > { %1358 = vset.pattern.permute.xlu1 %v1465_v8 }
 0x104   : > { %433 = vperm.xlu1 %1358, %v1231_v9   ;;  %1359 = vset.pattern.permute.xlu0 %v1464_v7 }
 0x105   : > { %612 = vperm.xlu0 %1359, %v1231_v9  }
 0x161   : > { %v387_v19 = vpop.permute.xlu1 %386 }
 0x162   : > { %v385_v20 = vpop.permute.xlu0 %384 }
 0x163   : > { %396 = vxpose.xlu1.b32.start [1/4] (short) (narrow) %v385_v20, 8 }
 0x165   : > { %v566_v21 = vpop.permute.xlu1 %565 }
 0x166   : > { %v564_v22 = vpop.permute.xlu0 %563 }
 0x167   : > { %397 = vxpose.xlu1.b32.cont [2/4] (short) (narrow) %v387_v19, 8  ;;  %575 = vxpose.xlu0.b32.start [1/4] (short) (narrow) %v564_v22, 8 }
 0x169   : > { %v570_v23 = vpop.permute.xlu1 %569 }
 0x16a   : > { %v389_v24 = vpop.permute.xlu0 %388 }
 0x16b   : > { %576 = vxpose.xlu0.b32.cont [2/4] (short) (narrow) %v566_v21, 8  ;;  %398 = vxpose.xlu1.b32.cont [3/4] (short) (narrow) %v389_v24, 8  ;;  %v747_v24 = vld [vmem:[%s1664_s4 + $0x8] sm:$0xff] }
 0x16d   : > { %v568_v25 = vpop.permute.xlu1 %567 }
 0x16e   : > { %v391_v26 = vpop.permute.xlu0 %390 }
 0x16f   : > { %577 = vxpose.xlu0.b32.cont [3/4] (short) (narrow) %v568_v25, 8  ;;  %399 = vxpose.xlu1.b32.end [4/4] (short) (narrow) %v391_v26, 8  ;;  %v748_v26 = vld [vmem:[%s1664_s4 + $0x10] sm:$0xff] }
 0x173   : > { %578 = vxpose.xlu0.b32.end [4/4] (short) (narrow) %v570_v23, 8  ;;  %v746_v23 = vld [vmem:[%s1664_s4] sm:$0xff] }
 0x174   : > { %v1297_v25 = vpack.c.bf16 %v747_v24, %v746_v23 }
 0x176   : > { %1298 = vmatprep.subr.bf16.mxu1 %v1297_v25 }
 0x17e   : > { %v609_v28 = vpop.permute.xlu1 %608 }
 0x17f   : > { %v430_v30 = vpop.permute.xlu0 %429 }
 0x183   : > { %v434_v31 = vpop.permute.xlu1 %433 }
 0x184   : > { %v613_v33 = vpop.permute.xlu0 %612 }
 0x19c   : > { %1360 = vset.pattern.permute.xlu0 %v1465_v8 }
 0x1e3   : > { %v412_v34 = vpop.trf.xlu1 }
 0x1e4   : > { %v439_v35 = vrot.slane %v412_v34, %v1572_v32 }
 0x1e6   : > { %v440_v36 = vadd.f32 %v439_v35, %v430_v30  ;;  %v441_v37 = vadd.f32 %v439_v35, %v434_v31 }
 0x1e7   : > { %v591_v38 = vpop.trf.xlu0 }
 0x1e8   : > { %v442_v39 = vmul.f32 0.2, %v440_v36  ;;  %v443_v40 = vmul.f32 0.2, %v441_v37  ;;  %v618_v41 = vrot.slane %v591_v38, %v1572_v32 }
 0x1ea   : > { %v444_v42 = vmin.f32 %v440_v36, %v442_v39  ;;  %v445_v43 = vmin.f32 %v441_v37, %v443_v40  ;;  %v619_v44 = vadd.f32 %v618_v41, %v609_v28  ;;  %v620_v45 = vadd.f32 %v618_v41, %v613_v33 }
 0x1eb   : > { %v1301_v28 = vpack.c.bf16 %v749_v27, %v748_v26 }
 0x1ec   : > { %v446_v47 = vmul.f32 1.442695, %v444_v42  ;;  %v448_v48 = vmul.f32 1.442695, %v445_v43  ;;  %v621_v49 = vmul.f32 0.2, %v619_v44 }
 0x1ed   : > { %v622_v50 = vmul.f32 0.2, %v620_v45 }
 0x1ee   : > { %1364 = vpow2.f32 %v446_v47  ;;  %v623_v51 = vmin.f32 %v619_v44, %v621_v49 }
 0x1ef   : > { %1366 = vpow2.f32 %v448_v48  ;;  %v624_v53 = vmin.f32 %v620_v45, %v622_v50 }
 0x1f0   : > { %v625_v55 = vmul.f32 1.442695, %v623_v51 }
 0x1f1   : > { %v627_v56 = vmul.f32 1.442695, %v624_v53 }
 0x1f2   : > { %1368 = vpow2.f32 %v625_v55 }
 0x1f3   : > { %1370 = vpow2.f32 %v627_v56 }
 0x1f8   : > { %v1365_v59 = vpop.eup %1364 }
 0x1f9   : > { %v1367_v60 = vpop.eup %1366  ;;  %v450_v61 = vsel %vm373_vm2, %v1365_v59, 0.0  ;;  %v1468_v59 = vmov 3  }
 0x1fa   : > { %1243 = vmatprep.mubr.msk.f32.mxu1 %vm375_vm1, %v450_v61  ;;  %v451_v62 = vsel %vm374_vm3, %v1367_v60, 0.0 }
 0x1fb   : > { %1244 = vmatmul.mubr.msk.f32.vlgmr.msra.gmra.mrb[0].mxu1 %vm375_vm1, %v451_v62 }
 0x1fc   : > { %v1369_v63 = vpop.eup %1368  ;;  %1300 = vmatpush3.bf16.msra.mxu1 %v1297_v25 }
 0x1fd   : > { %v1371_v0 = vpop.eup %1370  ;;  %v629_v1 = vsel %vm373_vm2, %v1369_v63, 0.0  ;;  %1302 = vmatprep.subr.bf16.mxu1 %v1301_v28 }
 0x1fe   : > { %v630_v2 = vsel %vm374_vm3, %v1371_v0, 0.0  ;;  %1254 = vmatprep.mubr.msk.f32.mxu0 %vm375_vm1, %v629_v1 }
 0x1ff   : > { %1255 = vmatmul.mubr.msk.f32.vlgmr.msra.gmra.mrb[4].mxu0 %vm375_vm1, %v630_v2 }
 0x200   : > { %1304 = vmatpush3.bf16.msra.mxu1 %v1301_v28 }
 0x201   : > { %1265 = vmatprep.subr.msk.mxu1 %vm758_vm4, %v750_v29 }
 0x204   : > { %1266 = vmatpush3.msk.msra.mxu1 %vm758_vm4, %v750_v29 }
 0x2ce   : > { %v1245_v3 = vpop.f32.mrb[0].mxu1 }
 0x2cf   : > { %1372 = vrcp.f32 %v1245_v3  ;;  %v524_v4 = vpop.f32.mrb[1].mxu1 }
 0x2d0   : > { %1374 = vrcp.f32 %v524_v4 }
 0x2d2   : > { %v1256_v5 = vpop.f32.mrb[4].mxu0 }
 0x2d3   : > { %1376 = vrcp.f32 %v1256_v5  ;;  %v703_v6 = vpop.f32.mrb[5].mxu0 }
 0x2d4   : > { %1378 = vrcp.f32 %v703_v6 }
 0x2d9   : > { %v1373_v7 = vpop.eup %1372 }
 0x2da   : > { %v1375_v8 = vpop.eup %1374  ;;  %v536_v9 = vmul.f32 %v1373_v7, %v1245_v3 }
 0x2db   : > { %v535_v10 = vmul.f32 %v1375_v8, %v524_v4 }
 0x2dc   : > { %v538_v11 = vsub.f32 2.0, %v536_v9 }
 0x2dd   : > { %v1377_v12 = vpop.eup %1376  ;;  %v537_v13 = vsub.f32 2.0, %v535_v10 }
 0x2de   : > { %v1379_v14 = vpop.eup %1378  ;;  %v540_v15 = vmul.f32 %v1373_v7, %v538_v11  ;;  %v715_v16 = vmul.f32 %v1377_v12, %v1256_v5  ;;  %v1193_v11 = vld [vmem:[%s262_s25] sm:$0xf]  }
 0x2df   : > { %v714_v17 = vmul.f32 %v1379_v14, %v703_v6  ;;  %v539_v18 = vmul.f32 %v1375_v8, %v537_v13 }
 0x2e0   : > { %548 = vperm.xlu1 %1358, %v540_v15   ;;  %v717_v20 = vsub.f32 2.0, %v715_v16  ;;  %v1195_v15 = vunpack.c.1.s8 %v1193_v11 }
 0x2e1   : > { %v716_v19 = vsub.f32 2.0, %v714_v17  ;;  %543 = vperm.xlu0 %1360, %v539_v18  }
 0x2e2   : > { %v719_v22 = vmul.f32 %v1377_v12, %v717_v20  ;;  %v842_v16 = vcvt.s32.f32 %v1195_v15 }
 0x2e3   : > { %v718_v21 = vmul.f32 %v1379_v14, %v716_v19  ;;  %v1194_v14 = vunpack.c.0.s8 %v1193_v11 }
 0x2e4   : > { %vm844_vm11 = vcmp.gt.f32.partialorder %v842_v16, 0.0 }
 0x2e5   : > { %722 = vperm.xlu1 %1358, %v718_v21   ;;  %1361 = vset.pattern.permute.xlu0 %v1468_v59  ;;  %v1470_v21 = vmov 2  }
 0x2e9   : > { %727 = vperm.xlu1 %1358, %v719_v22  }
 0x2ed   : > { %1362 = vset.pattern.permute.xlu1 %v1468_v59 }
 0x35f   : > { %v549_v30 = vpop.permute.xlu1 %548 }
 0x360   : > { %v552_v31 = vmul.f32 %v1245_v3, %v549_v30  ;;  %v544_v33 = vpop.permute.xlu0 %543 }
 0x361   : > { %v551_v34 = vmul.f32 %v544_v33, %v524_v4 }
 0x362   : > { %v557_v36 = vmul.f32 1.442695, %v552_v31  ;;  %vm554_vm8 = vcmp.gt.f32.partialorder %v552_v31, 0.0 }
 0x363   : > { %v555_v35 = vmul.f32 1.442695, %v551_v34  ;;  %vm553_vm5 = vcmp.gt.f32.partialorder %v551_v34, 0.0 }
 0x364   : > { %v723_v37 = vpop.permute.xlu1 %722 }
 0x365   : > { %1380 = vpow2.f32 %v555_v35  ;;  %v730_v38 = vmul.f32 %v723_v37, %v703_v6 }
 0x366   : > { %1382 = vpow2.f32 %v557_v36 }
 0x367   : > { %v734_v39 = vmul.f32 1.442695, %v730_v38  ;;  %vm732_vm6 = vcmp.gt.f32.partialorder %v730_v38, 0.0 }
 0x368   : > { %v728_v40 = vpop.permute.xlu1 %727 }
 0x369   : > { %1384 = vpow2.f32 %v734_v39  ;;  %v731_v41 = vmul.f32 %v1256_v5, %v728_v40 }
 0x36b   : > { %v736_v42 = vmul.f32 1.442695, %v731_v41  ;;  %vm733_vm9 = vcmp.gt.f32.partialorder %v731_v41, 0.0 }
 0x36d   : > { %1386 = vpow2.f32 %v736_v42 }
 0x36f   : > { %v1381_v43 = vpop.eup %1380 }
 0x370   : > { %v1383_v44 = vpop.eup %1382  ;;  %v1168_v45 = vadd.f32 -1.0, %v1381_v43 }
 0x371   : > { %v1169_v48 = vadd.f32 -1.0, %v1383_v44 }
 0x372   : > { %v561_v49 = vsel %vm553_vm5, %v551_v34, %v1168_v45 }
 0x373   : > { %v1385_v46 = vpop.eup %1384  ;;  %v562_v55 = vsel %vm554_vm8, %v552_v31, %v1169_v48 }
 0x374   : > { %v1172_v47 = vadd.f32 -1.0, %v1385_v46 }
 0x376   : > { %v740_v50 = vsel %vm732_vm6, %v730_v38, %v1172_v47 }
 0x377   : > { %v1387_v51 = vpop.eup %1386  ;;  %v742_v52 = vsel %vm269_vm0, %v561_v49, %v740_v50 }
 0x378   : > { %v1173_v53 = vadd.f32 -1.0, %v1387_v51  ;;  %v744_v54 = vsel %vm375_vm1, %v742_v52, 1.0 }
 0x379   : > { %1267 = vmatprep.mubr.msk.f32.mxu1 %vm751_vm7, %v744_v54 }
 0x37a   : > { %v741_v56 = vsel %vm733_vm9, %v731_v41, %v1173_v53 }
 0x37b   : > { %v743_v57 = vsel %vm269_vm0, %v562_v55, %v741_v56 }
 0x37c   : > { %v745_v58 = vsel %vm375_vm1, %v743_v57, 1.0 }
 0x37d   : > { %1268 = vmatmul.mubr.msk.f32.vlgmr.msra.gmra.mrb[2].mxu1 %vm751_vm7, %v745_v58 }
 0x450   : > { %v1269_v60 = vpop.f32.mrb[2].mxu1 }
 0x451   : > { %849 = vrot.lane.b32.xlu1 %v1269_v60, %s1469_s15  ;;  %v828_v61 = vpop.f32.mrb[3].mxu1 }
 0x452   : > { %v1305_v62 = vpack.c.bf16 %v1269_v60, %v828_v61  ;;  %847 = vrot.lane.b32.xlu0 %v828_v61, %s1469_s15 }
 0x454   : > { %1306 = vmatprep.subr.bf16.mxu0 %v1305_v62 }
 0x455   : > { %890 = vperm.xlu1 %1362, %v1269_v60   ;;  %1308 = vmatpush3.bf16.msra.mxu0 %v1305_v62 }
 0x456   : > { %886 = vperm.xlu0 %1361, %v828_v61  }
 0x45a   : > { %1363 = vset.pattern.permute.xlu0 %v1470_v21 }
 0x4c3   : > { %v850_v0 = vpop.permute.xlu1 %849 }
 0x4c4   : > { %v848_v63 = vpop.permute.xlu0 %847 }
 0x4c5   : > { %853 = vxpose.xlu1.b32.start [1/2] (short) (narrow) %v848_v63, 8 }
 0x4c9   : > { %854 = vxpose.xlu1.b32.end [2/2] (short) (narrow) %v850_v0, 8 }
 0x4d4   : > { %v891_v1 = vpop.permute.xlu1 %890 }
 0x4d5   : > { %v887_v4 = vpop.permute.xlu0 %886 }
 0x545   : > { %v869_v2 = vpop.trf.xlu1 }
 0x546   : > { %v896_v3 = vrot.slane %v869_v2, %v1572_v32  ;;  %v841_v32 = vcvt.s32.f32 %v1194_v14 }
 0x548   : > { %v897_v5 = vadd.f32 %v896_v3, %v887_v4  ;;  %v898_v6 = vadd.f32 %v896_v3, %v891_v1  ;;  %vm843_vm10 = vcmp.gt.f32.partialorder %v841_v32, 0.0 }
 0x54a   : > { %v899_v7 = vmul.f32 0.2, %v897_v5  ;;  %v900_v8 = vmul.f32 0.2, %v898_v6 }
 0x54c   : > { %v901_v9 = vmin.f32 %v897_v5, %v899_v7  ;;  %v902_v10 = vmin.f32 %v898_v6, %v900_v8 }
 0x54e   : > { %v903_v12 = vmul.f32 1.442695, %v901_v9  ;;  %v905_v13 = vmul.f32 1.442695, %v902_v10 }
 0x550   : > { %1388 = vpow2.f32 %v903_v12 }
 0x551   : > { %1390 = vpow2.f32 %v905_v13 }
 0x55a   : > { %v1389_v17 = vpop.eup %1388 }
 0x55b   : > { %v1391_v18 = vpop.eup %1390  ;;  %v907_v19 = vsel %vm843_vm10, %v1389_v17, 0.0 }
 0x55c   : > { %1274 = vmatprep.mubr.msk.f32.mxu0 %vm269_vm0, %v907_v19  ;;  %v908_v20 = vsel %vm844_vm11, %v1391_v18, 0.0 }
 0x55d   : > { %1275 = vmatmul.mubr.msk.f32.vlgmr.msra.gmra.mrb[6].mxu0 %vm269_vm0, %v908_v20 }
 0x630   : > { %v1276_v22 = vpop.f32.mrb[6].mxu0 }
 0x631   : > { %1392 = vrcp.f32 %v1276_v22  ;;  %v981_v23 = vpop.f32.mrb[7].mxu0 }
 0x632   : > { %1394 = vrcp.f32 %v981_v23 }
 0x63b   : > { %v1393_v24 = vpop.eup %1392 }
 0x63c   : > { %v1395_v25 = vpop.eup %1394  ;;  %v993_v26 = vmul.f32 %v1393_v24, %v1276_v22 }
 0x63d   : > { %v992_v27 = vmul.f32 %v1395_v25, %v981_v23 }
 0x63e   : > { %v995_v29 = vsub.f32 2.0, %v993_v26 }
 0x63f   : > { %v994_v28 = vsub.f32 2.0, %v992_v27 }
 0x640   : > { %v997_v31 = vmul.f32 %v1393_v24, %v995_v29 }
 0x641   : > { %v996_v30 = vmul.f32 %v1395_v25, %v994_v28 }
 0x643   : > { %1000 = vperm.xlu0 %1363, %v996_v30  }
 0x647   : > { %1005 = vperm.xlu0 %1363, %v997_v31  }
 0x6c2   : > { %v1001_v33 = vpop.permute.xlu0 %1000 }
 0x6c3   : > { %v1008_v34 = vmul.f32 %v1001_v33, %v981_v23 }
 0x6c5   : > { %v1012_v35 = vmul.f32 1.442695, %v1008_v34  ;;  %vm1010_vm12 = vcmp.gt.f32.partialorder %v1008_v34, 0.0 }
 0x6c6   : > { %v1006_v36 = vpop.permute.xlu0 %1005 }
 0x6c7   : > { %1396 = vpow2.f32 %v1012_v35  ;;  %v1009_v37 = vmul.f32 %v1276_v22, %v1006_v36 }
 0x6c9   : > { %v1014_v38 = vmul.f32 1.442695, %v1009_v37  ;;  %vm1011_vm13 = vcmp.gt.f32.partialorder %v1009_v37, 0.0 }
 0x6cb   : > { %1398 = vpow2.f32 %v1014_v38 }
 0x6d1   : > { %v1397_v39 = vpop.eup %1396 }
 0x6d2   : > { %v1179_v40 = vadd.f32 -1.0, %v1397_v39 }
 0x6d4   : > { %v1018_v41 = vsel %vm1010_vm12, %v1008_v34, %v1179_v40 }
 0x6d5   : > { %v1399_v42 = vpop.eup %1398  ;;  %1020 = vxpose.xlu0.b32.start [1/2] (short) (narrow) %v1018_v41, 8 }
 0x6d6   : > { %v1180_v43 = vadd.f32 -1.0, %v1399_v42 }
 0x6d8   : > { %v1019_v44 = vsel %vm1011_vm13, %v1009_v37, %v1180_v43 }
 0x6d9   : > { %1021 = vxpose.xlu0.b32.end [2/2] (short) (narrow) %v1019_v44, 8 }
 0x755   : > { %v1036_v45 = vpop.trf.xlu0 }
 0x756   : > { %1053 = vst.msk [vmem:[%s247_s30] sm:$0x3] %vm1052_vm14, %v1036_v45 }
 0x757   : > { %1413 = shalt.err (!%p1410_p3)
}
 0x758   : > { %s1414_s15 = scalar_lea.hbm %s1618_s10, 32  ;;  %s1418_s25 = scalar_lea.hbm %s1665_s5, 64 }
 0x759   : > { %p1415_p4 = scmp.ne.s32.totalorder %s1618_s10, %s1414_s15  ;;  %p1419_p9 = scmp.lt.u32.totalorder %s1618_s10, %s1665_s5 }
 0x75a   : > { %p1420_p10 = scmp.lt.u32.totalorder %s1418_s25, %s1414_s15  ;;  %p1422_p12 = scmp.lt.u32.totalorder %s1414_s15, %s1618_s10 }
 0x75b   : > { %p1416_p7 = pnand %p1415_p4, %p1540_p5 }
 0x75c   : > { %p1421_p11 = por %p1420_p10, %p1419_p9 }
 0x75d   : > { %p1417_p8 = pneg %p1416_p7 }
 0x75e   : > { %p1423_p13 = por %p1422_p12, %p1421_p11 }
 0x760   : > { %p1424_p0 = pnand %p1423_p13, %p1417_p8 }
 0x762   : > { %1427 = shalt.err (!%p1424_p0)
}
 0x763   : > { %1309 = dma.vmem_to_hbm [thread:$0]  (%p1540_p5), %s1620_s6, 32, %s1618_s10, %s1055_s11  }
 0x764 PF: > { %p1315_p1 = scmp.ge.s32.totalorder %s1462_s21, 2  ;;  %s1080_s26 = sand.u32 1, %s1450_s18  }
 0x765   : > { %s1081_s30 = scalar_lea.sflag [#allocation3], %s1080_s26 }
 0x766   : > { %p1312_p2 = pnand %p1315_p1, %p1544_p6 }
 0x768   : > { %1445 = dma.done.wait (!%p1312_p2), %s1081_s30, 32  }
 0x769   : > { %1447 = vsyncadd (!%p1312_p2), %s1081_s30, 4294967264  ;;  %p15_p3 = scmp.ge.s32.totalorder %s1527_s24, 4   ;;  %s1668_s18 = smov %s1454_s19 }
 0x76a   : > { %s1669_s19 = smov %s1458_s20  ;;  %s1670_s20 = smov %s1538_s27 }
 0x76b   : > { %s1671_s21 = smov %s1527_s24  ;;  %17 = sbr.rel (!%p15_p3) target bundleno = 3 (0x3), region = 81 }
 0x772   :  { %1086 = vsyncpa [#allocation3], 1 }
 0x773   :  { %1088 = vsyncpa [#allocation3 + $0x1], 1 }

</bundles_post_ra>
